<compile_context>
chip_gen: v7x
topology: tpu7x:2x2x1
jax: 0.10.0
libtpu: 0.0.40
codegen_flags: <defaults>
</compile_context>

<pallas_src>
import functools

import jax
import jax.numpy as jnp
from jax.experimental import pallas as pl
from jax.experimental.pallas import tpu as pltpu


D_IN = 32
D_HID = 128
D_OUT = 28 * 28          # 784: emitted directly (last block dim == full dim)
SET_SIZE = 5


def _round_up(x, m):
    return (x + m - 1) // m * m


def _choose_row_tile(m):
    """Row tile selection.

    - No padding of tiny batches to 128 rows (latency path: m=10 -> tm=16).
    - For m > 16 the grid always has >= 2 steps, so the single "parallel"
      grid axis can be sharded across both TensorCores on v7x.
    - Capped at 1024 to amortize per-grid-step overhead (~0.35 us) on large M
      while keeping VMEM usage trivially small on every generation.
    - Multiples of 16 keep bf16 sublane packing aligned.
    """
    return min(1024, _round_up((m + 1) // 2, 16))


def _eup_bf16_available():
    """True when the EUP has a bf16 transcendental path (v6e / v7x)."""
    try:
        kind = jax.devices()[0].device_kind.lower()
    except Exception:
        return False
    return not any(tag in kind for tag in ("v2", "v3", "v4", "v5"))


def _mlp_sigmoid_kernel(x_ref,
                        w1_ref, b1_ref,
                        w2_ref, b2_ref,
                        w3_ref, b3_ref,
                        w4_ref, b4_ref,
                        o_ref,
                        *, tanh_bf16):
    """Fused 4-layer MLP + sigmoid on one row tile.

    MXU operands are bf16; accumulation, bias adds and ReLUs stay in f32.
    Sigmoid is the tanh form (single EUP op); on v6e/v7x the tanh operand is
    bf16 (bf16 EUP path), on v5e it stays f32.
    """
    h = x_ref[...].astype(jnp.bfloat16)
    h = jnp.dot(h, w1_ref[...], preferred_element_type=jnp.float32) + b1_ref[...]
    h = jnp.maximum(h, 0.0).astype(jnp.bfloat16)
    h = jnp.dot(h, w2_ref[...], preferred_element_type=jnp.float32) + b2_ref[...]
    h = jnp.maximum(h, 0.0).astype(jnp.bfloat16)
    h = jnp.dot(h, w3_ref[...], preferred_element_type=jnp.float32) + b3_ref[...]
    h = jnp.maximum(h, 0.0).astype(jnp.bfloat16)
    logits = jnp.dot(h, w4_ref[...], preferred_element_type=jnp.float32) + b4_ref[...]
    if tanh_bf16:
        logits = logits.astype(jnp.bfloat16)
    probs = 0.5 * (jnp.tanh(0.5 * logits) + 1.0)   # == sigmoid(logits)
    o_ref[...] = probs.astype(o_ref.dtype)


@functools.partial(jax.jit, static_argnames=("size",))
def generator_forward(support, sample, params, size=SET_SIZE):
    """JAX equivalent of Generator.forward(((support, sample), _))."""
    (w1, b1), (w2, b2), (w3, b3), (w4, b4) = params

    m = sample.shape[0]
    assert m % size == 0, "sample rows must be a multiple of the set size"

    tm = _choose_row_tile(m)
    m_pad = _round_up(m, tm)

    x = sample  # kernel casts to bf16 itself; f32 or bf16 inputs both fine
    if m_pad != m:
        x = jnp.pad(x, ((0, m_pad - m), (0, 0)))

    tanh_bf16 = _eup_bf16_available()
    kernel = functools.partial(_mlp_sigmoid_kernel, tanh_bf16=tanh_bf16)

    grid = (m_pad // tm,)
    full = lambda i: (0, 0)  # weights/biases: one full block, resident across grid

    out = pl.pallas_call(
        kernel,
        out_shape=jax.ShapeDtypeStruct((m_pad, D_OUT), jnp.bfloat16),
        grid_spec=pltpu.PrefetchScalarGridSpec(
            num_scalar_prefetch=0,
            grid=grid,
            in_specs=[
                pl.BlockSpec((tm, D_IN), lambda i: (i, 0)),
                pl.BlockSpec((D_IN, D_HID), full), pl.BlockSpec((1, D_HID), full),
                pl.BlockSpec((D_HID, D_HID), full), pl.BlockSpec((1, D_HID), full),
                pl.BlockSpec((D_HID, D_HID), full), pl.BlockSpec((1, D_HID), full),
                pl.BlockSpec((D_HID, D_OUT), full), pl.BlockSpec((1, D_OUT), full),
            ],
            out_specs=pl.BlockSpec((tm, D_OUT), lambda i: (i, 0)),
        ),
        compiler_params=pltpu.CompilerParams(
            dimension_semantics=("parallel",)),
    )(x, w1, b1, w2, b2, w3, b3, w4, b4)

    if m_pad != m:
        out = out[:m]
    images = out.reshape(-1, size, 1, 28, 28)
    return support, images


def _init_linear(key, fan_in, fan_out):
    """Deterministic init mirroring torch.nn.Linear (uniform +-1/sqrt(fan_in)).

    Weight is returned as [fan_in, out] (transposed for x @ W), stored bf16
    for the MXU; bias stays f32 shaped (1, out)."""
    kw, kb = jax.random.split(key)
    bound = 1.0 / jnp.sqrt(fan_in)
    w = jax.random.uniform(kw, (fan_in, fan_out), jnp.float32, -bound, bound)
    b = jax.random.uniform(kb, (1, fan_out), jnp.float32, -bound, bound)
    return w.astype(jnp.bfloat16), b


def init_generator_combine_params(key):
    k1, k2, k3, k4 = jax.random.split(key, 4)
    return (
        _init_linear(k1, D_IN, D_HID),
        _init_linear(k2, D_HID, D_HID),
        _init_linear(k3, D_HID, D_HID),
        _init_linear(k4, D_HID, D_OUT),
    )


def _reference_images(sample, params, size, tanh_bf16):
    """Plain-JAX reference mirroring the kernel math (bf16 operands, f32 acc,
    tanh-form sigmoid, bf16 output)."""
    (w1, b1), (w2, b2), (w3, b3), (w4, b4) = params
    h = sample
    for w, b in ((w1, b1), (w2, b2), (w3, b3)):
        h = jnp.maximum(
            jnp.dot(h.astype(jnp.bfloat16), w, preferred_element_type=jnp.float32) + b,
            0.0)
    logits = jnp.dot(h.astype(jnp.bfloat16), w4,
                     preferred_element_type=jnp.float32) + b4
    if tanh_bf16:
        logits = logits.astype(jnp.bfloat16)
    probs = 0.5 * (jnp.tanh(0.5 * logits) + 1.0)
    return probs.astype(jnp.bfloat16).reshape(-1, size, 1, 28, 28)


if __name__ == "__main__":
    key = jax.random.PRNGKey(0)
    k_params, k_support, k_sample = jax.random.split(key, 3)

    batch = 2
    # support: passed through unchanged; sample: [batch*size, 32] as produced
    # by Generator.sample (16 latent dims ++ 16 local noise dims).
    support = jax.random.normal(k_support, (batch, SET_SIZE, 1, 28, 28), jnp.float32)
    sample = jax.random.normal(k_sample, (batch * SET_SIZE, D_IN), jnp.float32)

    params = init_generator_combine_params(k_params)

    out_support, out_images = generator_forward(support, sample, params)
    jax.block_until_ready(out_images)

    assert out_support.shape == (batch, SET_SIZE, 1, 28, 28)
    assert out_images.shape == (batch, SET_SIZE, 1, 28, 28)
    assert out_images.dtype == jnp.bfloat16
    imgs_f32 = out_images.astype(jnp.float32)
    assert bool(jnp.all((imgs_f32 >= 0.0) & (imgs_f32 <= 1.0)))
    assert bool(jnp.all(jnp.isfinite(imgs_f32)))

    # Cross-check against a plain-JAX reference of the same bf16/f32 math.
    ref = _reference_images(sample, params, SET_SIZE, _eup_bf16_available())
    max_err = jnp.max(jnp.abs(imgs_f32 - ref.astype(jnp.float32)))
    assert bool(max_err <= 2e-2), float(max_err)

    print("KERNEL_OK")
</pallas_src>

<mosaic_0001>
module attributes {stable_mosaic.version = 11 : i64} {
  func.func @_mlp_sigmoid_kernel(%arg0: i32, %arg1: memref<16x32xf32, #tpu.memory_space<vmem>>, %arg2: memref<32x128xbf16, #tpu.memory_space<vmem>>, %arg3: memref<1x128xf32, #tpu.memory_space<vmem>>, %arg4: memref<128x128xbf16, #tpu.memory_space<vmem>>, %arg5: memref<1x128xf32, #tpu.memory_space<vmem>>, %arg6: memref<128x128xbf16, #tpu.memory_space<vmem>>, %arg7: memref<1x128xf32, #tpu.memory_space<vmem>>, %arg8: memref<128x784xbf16, #tpu.memory_space<vmem>>, %arg9: memref<1x784xf32, #tpu.memory_space<vmem>>, %arg10: memref<16x784xbf16, #tpu.memory_space<vmem>>) attributes {dimension_semantics = [#tpu.dimension_semantics<parallel>], iteration_bounds = array<i64: 1>, scalar_prefetch = 0 : i64, scratch_operands = 0 : i64, tpu.core_type = #tpu.core_type<tc>, window_params = [{transform_indices = @transform_0, window_bounds = array<i64: 16, 32>}, {pipeline_mode = #tpu.pipeline_mode<synchronous>, transform_indices = @transform_1, window_bounds = array<i64: 32, 128>}, {pipeline_mode = #tpu.pipeline_mode<synchronous>, transform_indices = @transform_2, window_bounds = array<i64: 1, 128>}, {pipeline_mode = #tpu.pipeline_mode<synchronous>, transform_indices = @transform_3, window_bounds = array<i64: 128, 128>}, {pipeline_mode = #tpu.pipeline_mode<synchronous>, transform_indices = @transform_4, window_bounds = array<i64: 1, 128>}, {pipeline_mode = #tpu.pipeline_mode<synchronous>, transform_indices = @transform_5, window_bounds = array<i64: 128, 128>}, {pipeline_mode = #tpu.pipeline_mode<synchronous>, transform_indices = @transform_6, window_bounds = array<i64: 1, 128>}, {pipeline_mode = #tpu.pipeline_mode<synchronous>, transform_indices = @transform_7, window_bounds = array<i64: 128, 784>}, {pipeline_mode = #tpu.pipeline_mode<synchronous>, transform_indices = @transform_8, window_bounds = array<i64: 1, 784>}, {transform_indices = @transform_9, window_bounds = array<i64: 16, 784>}]} {
    %c0 = arith.constant 0 : index
    %c0_0 = arith.constant 0 : index
    %0 = vector.load %arg1[%c0, %c0_0] : memref<16x32xf32, #tpu.memory_space<vmem>>, vector<16x32xf32>
    %1 = arith.truncf %0 : vector<16x32xf32> to vector<16x32xbf16>
    %c0_1 = arith.constant 0 : index
    %c0_2 = arith.constant 0 : index
    %2 = vector.load %arg2[%c0_1, %c0_2] : memref<32x128xbf16, #tpu.memory_space<vmem>>, vector<32x128xbf16>
    %cst = arith.constant dense<0.000000e+00> : vector<16x128xf32>
    %3 = tpu.matmul %1, %2, %cst {dimension_numbers = #tpu.dot_dimension_numbers<[1], [0], [0], [1], [0, 0, 1, 1], [], []>} : vector<16x32xbf16>, vector<32x128xbf16>, vector<16x128xf32> -> vector<16x128xf32>
    %c0_3 = arith.constant 0 : index
    %c0_4 = arith.constant 0 : index
    %4 = vector.load %arg3[%c0_3, %c0_4] : memref<1x128xf32, #tpu.memory_space<vmem>>, vector<1x128xf32>
    %5 = vector.broadcast %4 : vector<1x128xf32> to vector<16x128xf32>
    %6 = arith.addf %3, %5 : vector<16x128xf32>
    %cst_5 = arith.constant 0.000000e+00 : f32
    %7 = vector.broadcast %cst_5 : f32 to vector<16x128xf32>
    %8 = arith.maximumf %6, %7 : vector<16x128xf32>
    %9 = arith.truncf %8 : vector<16x128xf32> to vector<16x128xbf16>
    %c0_6 = arith.constant 0 : index
    %c0_7 = arith.constant 0 : index
    %10 = vector.load %arg4[%c0_6, %c0_7] : memref<128x128xbf16, #tpu.memory_space<vmem>>, vector<128x128xbf16>
    %cst_8 = arith.constant dense<0.000000e+00> : vector<16x128xf32>
    %11 = tpu.matmul %9, %10, %cst_8 {dimension_numbers = #tpu.dot_dimension_numbers<[1], [0], [0], [1], [0, 0, 1, 1], [], []>} : vector<16x128xbf16>, vector<128x128xbf16>, vector<16x128xf32> -> vector<16x128xf32>
    %c0_9 = arith.constant 0 : index
    %c0_10 = arith.constant 0 : index
    %12 = vector.load %arg5[%c0_9, %c0_10] : memref<1x128xf32, #tpu.memory_space<vmem>>, vector<1x128xf32>
    %13 = vector.broadcast %12 : vector<1x128xf32> to vector<16x128xf32>
    %14 = arith.addf %11, %13 : vector<16x128xf32>
    %cst_11 = arith.constant 0.000000e+00 : f32
    %15 = vector.broadcast %cst_11 : f32 to vector<16x128xf32>
    %16 = arith.maximumf %14, %15 : vector<16x128xf32>
    %17 = arith.truncf %16 : vector<16x128xf32> to vector<16x128xbf16>
    %c0_12 = arith.constant 0 : index
    %c0_13 = arith.constant 0 : index
    %18 = vector.load %arg6[%c0_12, %c0_13] : memref<128x128xbf16, #tpu.memory_space<vmem>>, vector<128x128xbf16>
    %cst_14 = arith.constant dense<0.000000e+00> : vector<16x128xf32>
    %19 = tpu.matmul %17, %18, %cst_14 {dimension_numbers = #tpu.dot_dimension_numbers<[1], [0], [0], [1], [0, 0, 1, 1], [], []>} : vector<16x128xbf16>, vector<128x128xbf16>, vector<16x128xf32> -> vector<16x128xf32>
    %c0_15 = arith.constant 0 : index
    %c0_16 = arith.constant 0 : index
    %20 = vector.load %arg7[%c0_15, %c0_16] : memref<1x128xf32, #tpu.memory_space<vmem>>, vector<1x128xf32>
    %21 = vector.broadcast %20 : vector<1x128xf32> to vector<16x128xf32>
    %22 = arith.addf %19, %21 : vector<16x128xf32>
    %cst_17 = arith.constant 0.000000e+00 : f32
    %23 = vector.broadcast %cst_17 : f32 to vector<16x128xf32>
    %24 = arith.maximumf %22, %23 : vector<16x128xf32>
    %25 = arith.truncf %24 : vector<16x128xf32> to vector<16x128xbf16>
    %c0_18 = arith.constant 0 : index
    %c0_19 = arith.constant 0 : index
    %26 = vector.load %arg8[%c0_18, %c0_19] : memref<128x784xbf16, #tpu.memory_space<vmem>>, vector<128x784xbf16>
    %cst_20 = arith.constant dense<0.000000e+00> : vector<16x784xf32>
    %27 = tpu.matmul %25, %26, %cst_20 {dimension_numbers = #tpu.dot_dimension_numbers<[1], [0], [0], [1], [0, 0, 1, 1], [], []>} : vector<16x128xbf16>, vector<128x784xbf16>, vector<16x784xf32> -> vector<16x784xf32>
    %c0_21 = arith.constant 0 : index
    %c0_22 = arith.constant 0 : index
    %28 = vector.load %arg9[%c0_21, %c0_22] : memref<1x784xf32, #tpu.memory_space<vmem>>, vector<1x784xf32>
    %29 = vector.broadcast %28 : vector<1x784xf32> to vector<16x784xf32>
    %30 = arith.addf %27, %29 : vector<16x784xf32>
    %31 = arith.truncf %30 : vector<16x784xf32> to vector<16x784xbf16>
    %cst_23 = arith.constant 5.000000e-01 : bf16
    %32 = vector.broadcast %cst_23 : bf16 to vector<16x784xbf16>
    %33 = arith.mulf %32, %31 : vector<16x784xbf16>
    %34 = math.tanh %33 : vector<16x784xbf16>
    %cst_24 = arith.constant 1.000000e+00 : bf16
    %35 = vector.broadcast %cst_24 : bf16 to vector<16x784xbf16>
    %36 = arith.addf %34, %35 : vector<16x784xbf16>
    %cst_25 = arith.constant 5.000000e-01 : bf16
    %37 = vector.broadcast %cst_25 : bf16 to vector<16x784xbf16>
    %38 = arith.mulf %37, %36 : vector<16x784xbf16>
    %c0_26 = arith.constant 0 : index
    %c0_27 = arith.constant 0 : index
    %39 = vector.load %arg10[%c0_26, %c0_27] : memref<16x784xbf16, #tpu.memory_space<vmem>>, vector<16x784xbf16>
    tpu.vector_store %arg10[%c0_26, %c0_27], %38 {strides = array<i32>} : memref<16x784xbf16, #tpu.memory_space<vmem>>, vector<16x784xbf16>,
    return
  }
  func.func @transform_0(%arg0: i32) -> (i32, i32) {
    %c0_i32 = arith.constant 0 : i32
    %c0_i32_0 = arith.constant 0 : i32
    return %arg0, %c0_i32 : i32, i32
  }
  func.func @transform_1(%arg0: i32) -> (i32, i32) {
    %c0_i32 = arith.constant 0 : i32
    %c0_i32_0 = arith.constant 0 : i32
    %c0_i32_1 = arith.constant 0 : i32
    return %c0_i32, %c0_i32_0 : i32, i32
  }
  func.func @transform_2(%arg0: i32) -> (i32, i32) {
    %c0_i32 = arith.constant 0 : i32
    %c0_i32_0 = arith.constant 0 : i32
    %c0_i32_1 = arith.constant 0 : i32
    return %c0_i32, %c0_i32_0 : i32, i32
  }
  func.func @transform_3(%arg0: i32) -> (i32, i32) {
    %c0_i32 = arith.constant 0 : i32
    %c0_i32_0 = arith.constant 0 : i32
    %c0_i32_1 = arith.constant 0 : i32
    return %c0_i32, %c0_i32_0 : i32, i32
  }
  func.func @transform_4(%arg0: i32) -> (i32, i32) {
    %c0_i32 = arith.constant 0 : i32
    %c0_i32_0 = arith.constant 0 : i32
    %c0_i32_1 = arith.constant 0 : i32
    return %c0_i32, %c0_i32_0 : i32, i32
  }
  func.func @transform_5(%arg0: i32) -> (i32, i32) {
    %c0_i32 = arith.constant 0 : i32
    %c0_i32_0 = arith.constant 0 : i32
    %c0_i32_1 = arith.constant 0 : i32
    return %c0_i32, %c0_i32_0 : i32, i32
  }
  func.func @transform_6(%arg0: i32) -> (i32, i32) {
    %c0_i32 = arith.constant 0 : i32
    %c0_i32_0 = arith.constant 0 : i32
    %c0_i32_1 = arith.constant 0 : i32
    return %c0_i32, %c0_i32_0 : i32, i32
  }
  func.func @transform_7(%arg0: i32) -> (i32, i32) {
    %c0_i32 = arith.constant 0 : i32
    %c0_i32_0 = arith.constant 0 : i32
    %c0_i32_1 = arith.constant 0 : i32
    return %c0_i32, %c0_i32_0 : i32, i32
  }
  func.func @transform_8(%arg0: i32) -> (i32, i32) {
    %c0_i32 = arith.constant 0 : i32
    %c0_i32_0 = arith.constant 0 : i32
    %c0_i32_1 = arith.constant 0 : i32
    return %c0_i32, %c0_i32_0 : i32, i32
  }
  func.func @transform_9(%arg0: i32) -> (i32, i32) {
    %c0_i32 = arith.constant 0 : i32
    %c0_i32_0 = arith.constant 0 : i32
    return %arg0, %c0_i32 : i32, i32
  }
}

</mosaic_0001>

<bundles_post_ra>
// kernel: generator_forward.1
= control target key start
LH: loop header
LB: loop body
LE: loop exit
PB: predicated region body
PF: predicated region fallthrough
CT: control target
= control target key end

     0   :  { %v1282_v0 = vmov 0.0   ;;  %vm1283_vm0 = vmmov 0   ;;  %vm61_vm1 = vcmask 261120   ;;  %vm973_vm2 = vcmask 125952   ;;  %s1651_s1 = inlined_call_operand.vmem [shape: bf16[32,128], index: 1, kind: input, shape index: {}]   ;;  %s1652_s0 = inlined_call_operand.vmem [shape: f32[16,32], index: 0, kind: input, shape index: {}]   ;;  %s1653_s3 = inlined_call_operand.vmem [shape: bf16[128,128], index: 3, kind: input, shape index: {}]   ;;  %s1654_s5 = inlined_call_operand.vmem [shape: bf16[128,128], index: 5, kind: input, shape index: {}]   ;;  %s1655_s2 = inlined_call_operand.vmem [shape: f32[1,128], index: 2, kind: input, shape index: {}]   ;;  %s1656_s7 = inlined_call_operand.vmem [shape: bf16[128,784], index: 7, kind: input, shape index: {}]   ;;  %s1657_s4 = inlined_call_operand.vmem [shape: f32[1,128], index: 4, kind: input, shape index: {}]   ;;  %s1658_s6 = inlined_call_operand.vmem [shape: f32[1,128], index: 6, kind: input, shape index: {}]   ;;  %s1659_s8 = inlined_call_operand.vmem [shape: f32[1,784], index: 8, kind: input, shape index: {}]   ;;  %s1660_s9 = inlined_call_operand.vmem [shape: bf16[16,784], index: 9, kind: output, shape index: {}]  }
   0x1   :  { %1099 = vmatprep.subr.bf16.mxu0 %v1282_v0  ;;  %v1170_v1 = vld [vmem:[%s1651_s1] sm:$0xff]   ;;  %1103 = vmatprep.mubr.msk.bf16.mxu0 %vm1283_vm0, %v1282_v0  ;;  %v1171_v2 = vld [vmem:[%s1651_s1 + $0x8] sm:$0xff]   ;;  %v1174_v8 = vld [vmem:[%s1653_s3 + $0x10] sm:$0xff]  }
   0x2   :  { %1107 = vmatprep.subr.bf16.mxu1 %v1282_v0  ;;  %1123 = vmatprep.mubr.msk.bf16.mxu1 %vm1283_vm0, %v1282_v0  ;;  %v35_v3 = vld [vmem:[%s1652_s0] sm:$0xff]  ;;  %v36_v4 = vld [vmem:[%s1652_s0 + $0x8] sm:$0xff]  ;;  %v1175_v9 = vld [vmem:[%s1653_s3 + $0x18] sm:$0xff]  }
   0x3   :  { %1100 = vmatpush3.bf16.msra.mxu0 %v1170_v1  ;;  %v1172_v5 = vld [vmem:[%s1653_s3] sm:$0xff]   ;;  %v37_v6 = vpack.c.bf16 %v36_v4, %v35_v3  ;;  %v1173_v7 = vld [vmem:[%s1653_s3 + $0x8] sm:$0xff]   ;;  %v1178_v12 = vld [vmem:[%s1653_s3 + $0x30] sm:$0xff]  }
   0x4   :  { %1101 = vmatprep.subr.bf16.mxu0 %v1282_v0  ;;  %1108 = vmatpush3.bf16.msra.mxu1 %v1172_v5  ;;  %v1176_v10 = vld [vmem:[%s1653_s3 + $0x20] sm:$0xff]   ;;  %v1177_v11 = vld [vmem:[%s1653_s3 + $0x28] sm:$0xff]   ;;  %v1179_v13 = vld [vmem:[%s1653_s3 + $0x38] sm:$0xff]  }
   0x5   :  { %1109 = vmatprep.subr.bf16.mxu1 %v1282_v0  ;;  %v1180_v14 = vld [vmem:[%s1654_s5] sm:$0xff]   ;;  %v1181_v15 = vld [vmem:[%s1654_s5 + $0x8] sm:$0xff]   ;;  %v1182_v16 = vld [vmem:[%s1654_s5 + $0x10] sm:$0xff]  }
   0x6   :  { %v1183_v17 = vld [vmem:[%s1654_s5 + $0x18] sm:$0xff]   ;;  %v1184_v18 = vld [vmem:[%s1654_s5 + $0x20] sm:$0xff]   ;;  %v1185_v19 = vld [vmem:[%s1654_s5 + $0x28] sm:$0xff]  }
   0x7   :  { %1102 = vmatpush3.bf16.msra.mxu0 %v1171_v2  ;;  %v983_v20 = vld [vmem:[%s1655_s2] ss:$0 sm:$0xff]  ;;  %v1186_v30 = vld [vmem:[%s1654_s5 + $0x30] sm:$0xff]   ;;  %v1187_v31 = vld [vmem:[%s1654_s5 + $0x38] sm:$0xff]  }
   0x8   :  { %1127 = vmatprep.subr.bf16.mxu0 %v1282_v0  ;;  %1110 = vmatpush3.bf16.msra.mxu1 %v1173_v7  ;;  %v1188_v32 = vld [vmem:[%s1656_s7] ss:$28 sps:$4 sm:$0xff]   ;;  %v1193_v34 = vld [vmem:[%s1656_s7 + $0xc] ss:$28 sps:$4 sm:$0xff]   ;;  %v1194_v36 = vld [vmem:[%s1656_s7 + $0x38] ss:$28 sps:$4 sm:$0xff]  }
   0x9   :  { %1111 = vmatprep.subr.bf16.mxu1 %v1282_v0  ;;  %v1190_v33 = vld [vmem:[%s1656_s7 + $0x4] ss:$28 sps:$4 sm:$0xff]   ;;  %v1196_v35 = vld [vmem:[%s1656_s7 + $0x3c] ss:$28 sps:$4 sm:$0xff]   ;;  %v1202_v37 = vld [vmem:[%s1656_s7 + $0x74] ss:$28 sps:$4 sm:$0xff]  }
   0xa   :  { %1104 = vmatmul.mubr.msk.bf16.vlgmr.msra.gmra.mrb[0].mxu0 %vm61_vm1, %v37_v6  ;;  %v1200_v38 = vld [vmem:[%s1656_s7 + $0x70] ss:$28 sps:$4 sm:$0xff]   ;;  %v1206_v40 = vld [vmem:[%s1656_s7 + $0xa8] ss:$28 sps:$4 sm:$0xff]   ;;  %v1212_v42 = vld [vmem:[%s1656_s7 + $0xe0] ss:$28 sps:$4 sm:$0xff]  }
   0xb   :  { %1143 = vmatprep.mubr.msk.bf16.mxu0 %vm1283_vm0, %v1282_v0  ;;  %1128 = vmatpush3.bf16.msra.mxu0 %v1180_v14  ;;  %v1208_v39 = vld [vmem:[%s1656_s7 + $0xac] ss:$28 sps:$4 sm:$0xff]   ;;  %v1214_v41 = vld [vmem:[%s1656_s7 + $0xe4] ss:$28 sps:$4 sm:$0xff]   ;;  %v1220_v43 = vld [vmem:[%s1656_s7 + $0x11c] ss:$28 sps:$4 sm:$0xff]  }
   0xc   :  { %1112 = vmatpush3.bf16.msra.mxu1 %v1174_v8  ;;  %1129 = vmatprep.subr.bf16.mxu0 %v1282_v0  ;;  %v1218_v44 = vld [vmem:[%s1656_s7 + $0x118] ss:$28 sps:$4 sm:$0xff]   ;;  %v987_v45 = vld [vmem:[%s1657_s4] ss:$0 sm:$0xff]  ;;  %v1191_v54 = vld [vmem:[%s1656_s7 + $0x8] ss:$28 sps:$4 sm:$0xff]  }
   0xd   :  { %1113 = vmatprep.subr.bf16.mxu1 %v1282_v0  ;;  %v1199_v56 = vld [vmem:[%s1656_s7 + $0x44] ss:$28 sps:$4 sm:$0xff]   ;;  %v1205_v58 = vld [vmem:[%s1656_s7 + $0x7c] ss:$28 sps:$4 sm:$0xff]   ;;  %v1211_v60 = vld [vmem:[%s1656_s7 + $0xb4] ss:$28 sps:$4 sm:$0xff]  }
   0xe   :  { %v1197_v57 = vld [vmem:[%s1656_s7 + $0x40] ss:$28 sps:$4 sm:$0xff]   ;;  %v1203_v59 = vld [vmem:[%s1656_s7 + $0x78] ss:$28 sps:$4 sm:$0xff]   ;;  %v1209_v61 = vld [vmem:[%s1656_s7 + $0xb0] ss:$28 sps:$4 sm:$0xff]  }
   0xf   :  { %1130 = vmatpush3.bf16.msra.mxu0 %v1181_v15  ;;  %v1217_v62 = vld [vmem:[%s1656_s7 + $0xec] ss:$28 sps:$4 sm:$0xff]   ;;  %v1223_v1 = vld [vmem:[%s1656_s7 + $0x124] ss:$28 sps:$4 sm:$0xff]   ;;  %v1226_v3 = vld [vmem:[%s1656_s7 + $0x154] ss:$28 sps:$4 sm:$0xff]  }
  0x10   :  { %1114 = vmatpush3.bf16.msra.mxu1 %v1175_v9  ;;  %1131 = vmatprep.subr.bf16.mxu0 %v1282_v0  ;;  %v1215_v63 = vld [vmem:[%s1656_s7 + $0xe8] ss:$28 sps:$4 sm:$0xff]   ;;  %v1221_v2 = vld [vmem:[%s1656_s7 + $0x120] ss:$28 sps:$4 sm:$0xff]   ;;  %v1224_v5 = vld [vmem:[%s1656_s7 + $0x150] ss:$28 sps:$4 sm:$0xff]  }
  0x11   :  { %1115 = vmatprep.subr.bf16.mxu1 %v1282_v0  ;;  %v1229_v4 = vld [vmem:[%s1656_s7 + $0x15c] ss:$28 sps:$4 sm:$0xff]   ;;  %v1232_v7 = vld [vmem:[%s1656_s7 + $0x18c] ss:$28 sps:$4 sm:$0xff]   ;;  %v1235_v8 = vld [vmem:[%s1656_s7 + $0x194] ss:$28 sps:$4 sm:$0xff]  }
  0x12   :  { %v1227_v6 = vld [vmem:[%s1656_s7 + $0x158] ss:$28 sps:$4 sm:$0xff]   ;;  %v1230_v9 = vld [vmem:[%s1656_s7 + $0x188] ss:$28 sps:$4 sm:$0xff]  }
  0x13   :  { %1132 = vmatpush3.bf16.msra.mxu0 %v1182_v16 }
  0x14   :  { %1116 = vmatpush3.bf16.msra.mxu1 %v1176_v10  ;;  %1133 = vmatprep.subr.bf16.mxu0 %v1282_v0  ;;  %v1233_v10 = vld [vmem:[%s1656_s7 + $0x190] ss:$28 sps:$4 sm:$0xff]  }
  0x15   :  { %1117 = vmatprep.subr.bf16.mxu1 %v1282_v0 }
  0x17   :  { %1134 = vmatpush3.bf16.msra.mxu0 %v1183_v17 }
  0x18   :  { %1118 = vmatpush3.bf16.msra.mxu1 %v1177_v11  ;;  %1135 = vmatprep.subr.bf16.mxu0 %v1282_v0  ;;  %v1238_v11 = vld [vmem:[%s1656_s7 + $0x14] ss:$28 sps:$4 sm:$0xff]  }
  0x19   :  { %1119 = vmatprep.subr.bf16.mxu1 %v1282_v0 }
  0x1b   :  { %1136 = vmatpush3.bf16.msra.mxu0 %v1184_v18 }
  0x1c   :  { %1120 = vmatpush3.bf16.msra.mxu1 %v1178_v12  ;;  %1137 = vmatprep.subr.bf16.mxu0 %v1282_v0  ;;  %v1284_v12 = vmov 0  }
  0x1d   :  { %1121 = vmatprep.subr.bf16.mxu1 %v1282_v0 }
  0x1f   :  { %1138 = vmatpush3.bf16.msra.mxu0 %v1185_v19 }
  0x20   :  { %1122 = vmatpush3.bf16.msra.mxu1 %v1179_v13  ;;  %1139 = vmatprep.subr.bf16.mxu0 %v1282_v0  ;;  %v996_v13 = vld [vmem:[%s1658_s6] ss:$0 sm:$0xff] }
  0x21   :  { %728 = vmatprep.subr.bf16.mxu1 %v1190_v33  ;;  %v1251_v33 = vld [vmem:[%s1656_s7 + $0xc0] ss:$28 sps:$4 sm:$0xff]  }
  0x23   :  { %1140 = vmatpush3.bf16.msra.mxu0 %v1186_v30  ;;  %v1247_v30 = vld [vmem:[%s1656_s7 + $0x88] ss:$28 sps:$4 sm:$0xff]  }
  0x24   :  { %1141 = vmatprep.subr.bf16.mxu0 %v1282_v0 }
  0x27   :  { %1142 = vmatpush3.bf16.msra.mxu0 %v1187_v31  ;;  %v1250_v31 = vld [vmem:[%s1656_s7 + $0xbc] ss:$28 sps:$4 sm:$0xff]  }
  0x28   :  { %771 = vmatprep.subr.bf16.mxu0 %v1193_v34  ;;  %v1254_v34 = vld [vmem:[%s1656_s7 + $0xf4] ss:$28 sps:$4 sm:$0xff]  }
  0xdd   :  { %v99_v21 = vpop.f32.mrb[0].mxu0 }
  0xde   :  { %v100_v22 = vadd.f32 %v983_v20, %v99_v21  ;;  %v1105_v23 = vpop.f32.mrb[1].mxu0 }
  0xdf   :  { %v102_v24 = vpop.f32.mrb[2].mxu0  ;;  %v1239_v23 = vld [vmem:[%s1656_s7 + $0x18] ss:$28 sps:$4 sm:$0xff]  }
  0xe0   :  { %v103_v25 = vadd.f32 %v983_v20, %v102_v24  ;;  %v1106_v26 = vpop.f32.mrb[3].mxu0  ;;  %v106_v27 = vmax.f32 %v100_v22, 0.0  ;;  %v1236_v22 = vld [vmem:[%s1656_s7 + $0x10] ss:$28 sps:$4 sm:$0xff]  }
  0xe1   :  { %v1240_v26 = vld [vmem:[%s1656_s7 + $0x48] ss:$28 sps:$4 sm:$0xff]  }
  0xe2   :  { %v107_v28 = vmax.f32 %v103_v25, 0.0  ;;  %v1242_v25 = vld [vmem:[%s1656_s7 + $0x4c] ss:$28 sps:$4 sm:$0xff]  }
  0xe4   :  { %v108_v29 = vpack.c.bf16 %v107_v28, %v106_v27  ;;  %v1243_v27 = vld [vmem:[%s1656_s7 + $0x50] ss:$28 sps:$4 sm:$0xff]   ;;  %v1246_v28 = vld [vmem:[%s1656_s7 + $0x84] ss:$28 sps:$4 sm:$0xff]  }
  0xe6   :  { %1124 = vmatmul.mubr.bf16.vlgmr.msra.gmra.mrb[0].mxu1 %v108_v29  ;;  %v1244_v29 = vld [vmem:[%s1656_s7 + $0x80] ss:$28 sps:$4 sm:$0xff]  }
  0xe7   :  { %729 = vmatpush1.bf16.msra.mxu1 %v1188_v32  ;;  %760 = vmatprep.mubr.bf16.mxu1 %v1284_v12  ;;  %v1248_v32 = vld [vmem:[%s1656_s7 + $0xb8] ss:$28 sps:$4 sm:$0xff]  }
  0xe8   :  { %730 = vmatprep.subr.bf16.mxu1 %v1196_v35  ;;  %v1252_v35 = vld [vmem:[%s1656_s7 + $0xf0] ss:$28 sps:$4 sm:$0xff]  }
  0xeb   :  { %731 = vmatpush1.bf16.msra.mxu1 %v1194_v36  ;;  %v1255_v36 = vld [vmem:[%s1656_s7 + $0xf8] ss:$28 sps:$4 sm:$0xff]  }
  0xec   :  { %732 = vmatprep.subr.bf16.mxu1 %v1202_v37  ;;  %v1258_v37 = vld [vmem:[%s1656_s7 + $0x12c] ss:$28 sps:$4 sm:$0xff]  }
  0xef   :  { %733 = vmatpush1.bf16.msra.mxu1 %v1200_v38  ;;  %v1256_v38 = vld [vmem:[%s1656_s7 + $0x128] ss:$28 sps:$4 sm:$0xff]  }
  0xf0   :  { %734 = vmatprep.subr.bf16.mxu1 %v1208_v39  ;;  %v1259_v39 = vld [vmem:[%s1656_s7 + $0x130] ss:$28 sps:$4 sm:$0xff]  }
  0xf3   :  { %735 = vmatpush1.bf16.msra.mxu1 %v1206_v40  ;;  %v1262_v40 = vld [vmem:[%s1656_s7 + $0x164] ss:$28 sps:$4 sm:$0xff]  }
  0xf4   :  { %736 = vmatprep.subr.bf16.mxu1 %v1214_v41  ;;  %v1260_v41 = vld [vmem:[%s1656_s7 + $0x160] ss:$28 sps:$4 sm:$0xff]  }
  0xf7   :  { %737 = vmatpush1.bf16.msra.mxu1 %v1212_v42  ;;  %v1263_v42 = vld [vmem:[%s1656_s7 + $0x168] ss:$28 sps:$4 sm:$0xff]  }
  0xf8   :  { %738 = vmatprep.subr.bf16.mxu1 %v1220_v43  ;;  %v1266_v43 = vld [vmem:[%s1656_s7 + $0x19c] ss:$28 sps:$4 sm:$0xff]  }
  0xfb   :  { %739 = vmatpush1.bf16.msra.mxu1 %v1218_v44  ;;  %v1264_v44 = vld [vmem:[%s1656_s7 + $0x198] ss:$28 sps:$4 sm:$0xff]  }
  0xfc   :  { %740 = vmatprep.subr.bf16.mxu1 %v1226_v3 }
  0xff   :  { %741 = vmatpush1.bf16.msra.mxu1 %v1224_v5 }
 0x100   :  { %742 = vmatprep.subr.bf16.mxu1 %v1232_v7 }
 0x103   :  { %743 = vmatpush1.bf16.msra.mxu1 %v1230_v9 }
 0x104   :  { %814 = vmatprep.subr.bf16.mxu1 %v1238_v11 }
 0x1b9   :  { %v214_v46 = vpop.f32.mrb[0].mxu1 }
 0x1ba   :  { %v215_v47 = vadd.f32 %v987_v45, %v214_v46  ;;  %v1125_v48 = vpop.f32.mrb[1].mxu1  ;;  %v405_v46 = vlaneseq }
 0x1bb   :  { %v217_v49 = vpop.f32.mrb[2].mxu1 }
 0x1bc   :  { %v218_v50 = vadd.f32 %v987_v45, %v217_v49  ;;  %v1126_v51 = vpop.f32.mrb[3].mxu1  ;;  %v221_v52 = vmax.f32 %v215_v47, 0.0  ;;  %v1267_v45 = vld [vmem:[%s1656_s7 + $0x1a0] ss:$28 sps:$4 sm:$0xff]   ;;  %v1606_v47 = vshrl.u32 %v405_v46, 7 }
 0x1be   :  { %v222_v53 = vmax.f32 %v218_v50, 0.0  ;;  %v407_v48 = vsub.s32 0, %v1606_v47  ;;  %v415_v49 = vsub.s32 2, %v1606_v47  ;;  %v1613_v50 = vld [vmem:[%s1659_s8] sm:$0x7f]  ;;  %v411_v51 = vsub.s32 1, %v1606_v47 }
 0x1c0   :  { %v223_v55 = vpack.c.bf16 %v222_v53, %v221_v52  ;;  %v408_v52 = vrot.slane %v1613_v50, %v407_v48  ;;  %v416_v53 = vrot.slane %v1613_v50, %v415_v49 }
 0x1c2   :  { %1144 = vmatmul.mubr.bf16.vlgmr.msra.gmra.mrb[4].mxu0 %v223_v55 }
 0x1c3   :  { %772 = vmatpush1.bf16.msra.mxu0 %v1191_v54  ;;  %803 = vmatprep.mubr.bf16.mxu0 %v1284_v12 }
 0x1c4   :  { %773 = vmatprep.subr.bf16.mxu0 %v1199_v56  ;;  %v412_v56 = vrot.slane %v1613_v50, %v411_v51 }
 0x1c7   :  { %774 = vmatpush1.bf16.msra.mxu0 %v1197_v57 }
 0x1c8   :  { %775 = vmatprep.subr.bf16.mxu0 %v1205_v58 }
 0x1cb   :  { %776 = vmatpush1.bf16.msra.mxu0 %v1203_v59 }
 0x1cc   :  { %777 = vmatprep.subr.bf16.mxu0 %v1211_v60 }
 0x1cf   :  { %778 = vmatpush1.bf16.msra.mxu0 %v1209_v61 }
 0x1d0   :  { %779 = vmatprep.subr.bf16.mxu0 %v1217_v62 }
 0x1d3   :  { %780 = vmatpush1.bf16.msra.mxu0 %v1215_v63 }
 0x1d4   :  { %781 = vmatprep.subr.bf16.mxu0 %v1223_v1 }
 0x1d7   :  { %782 = vmatpush1.bf16.msra.mxu0 %v1221_v2 }
 0x1d8   :  { %783 = vmatprep.subr.bf16.mxu0 %v1229_v4 }
 0x1db   :  { %784 = vmatpush1.bf16.msra.mxu0 %v1227_v6 }
 0x1dc   :  { %785 = vmatprep.subr.bf16.mxu0 %v1235_v8 }
 0x1df   :  { %786 = vmatpush1.bf16.msra.mxu0 %v1233_v10 }
 0x1e0   :  { %1147 = vmatprep.subr.bf16.mxu0 %v1282_v0 }
 0x295   :  { %v329_v14 = vpop.f32.mrb[4].mxu0 }
 0x296   :  { %v330_v15 = vadd.f32 %v996_v13, %v329_v14  ;;  %v1145_v16 = vpop.f32.mrb[5].mxu0 }
 0x297   :  { %v332_v17 = vpop.f32.mrb[6].mxu0 }
 0x298   :  { %v333_v18 = vadd.f32 %v996_v13, %v332_v17  ;;  %v1146_v19 = vpop.f32.mrb[7].mxu0  ;;  %v336_v20 = vmax.f32 %v330_v15, 0.0 }
 0x29a   :  { %v337_v21 = vmax.f32 %v333_v18, 0.0 }
 0x29c   :  { %v338_v24 = vpack.c.bf16 %v337_v21, %v336_v20 }
 0x29e   :  { %761 = vmatmul.mubr.bf16.vlgmr.msra.gmra.mrb[4].mxu1 %v338_v24  ;;  %804 = vmatmul.mubr.bf16.vlgmr.msra.gmra.mrb[8].mxu0 %v338_v24 }
 0x29f   :  { %815 = vmatpush1.bf16.msra.mxu1 %v1236_v22  ;;  %1148 = vmatpush3.bf16.msra.mxu0 %v1239_v23 }
 0x2a0   :  { %816 = vmatprep.subr.bf16.mxu1 %v1242_v25  ;;  %1149 = vmatprep.subr.bf16.mxu0 %v1282_v0 }
 0x2a1   :  { %846 = vmatprep.mubr.bf16.mxu1 %v1284_v12  ;;  %1163 = vmatprep.mubr.msk.bf16.mxu0 %vm1283_vm0, %v1282_v0 }
 0x2a3   :  { %817 = vmatpush1.bf16.msra.mxu1 %v1240_v26  ;;  %1150 = vmatpush3.bf16.msra.mxu0 %v1243_v27 }
 0x2a4   :  { %818 = vmatprep.subr.bf16.mxu1 %v1246_v28  ;;  %1151 = vmatprep.subr.bf16.mxu0 %v1282_v0 }
 0x2a7   :  { %819 = vmatpush1.bf16.msra.mxu1 %v1244_v29  ;;  %1152 = vmatpush3.bf16.msra.mxu0 %v1247_v30 }
 0x2a8   :  { %820 = vmatprep.subr.bf16.mxu1 %v1250_v31  ;;  %1153 = vmatprep.subr.bf16.mxu0 %v1282_v0  ;;  %v423_v31 = vsub.s32 4, %v1606_v47 }
 0x2ab   :  { %821 = vmatpush1.bf16.msra.mxu1 %v1248_v32  ;;  %1154 = vmatpush3.bf16.msra.mxu0 %v1251_v33  ;;  %v431_v32 = vsub.s32 6, %v1606_v47 }
 0x2ac   :  { %822 = vmatprep.subr.bf16.mxu1 %v1254_v34  ;;  %1155 = vmatprep.subr.bf16.mxu0 %v1282_v0 }
 0x2af   :  { %823 = vmatpush1.bf16.msra.mxu1 %v1252_v35  ;;  %1156 = vmatpush3.bf16.msra.mxu0 %v1255_v36  ;;  %v427_v35 = vsub.s32 5, %v1606_v47  ;;  %v424_v36 = vrot.slane %v1613_v50, %v423_v31 }
 0x2b0   :  { %824 = vmatprep.subr.bf16.mxu1 %v1258_v37  ;;  %1157 = vmatprep.subr.bf16.mxu0 %v1282_v0  ;;  %v432_v37 = vrot.slane %v1613_v50, %v431_v32 }
 0x2b3   :  { %825 = vmatpush1.bf16.msra.mxu1 %v1256_v38  ;;  %1158 = vmatpush3.bf16.msra.mxu0 %v1259_v39 }
 0x2b4   :  { %826 = vmatprep.subr.bf16.mxu1 %v1262_v40  ;;  %1159 = vmatprep.subr.bf16.mxu0 %v1282_v0  ;;  %v428_v40 = vrot.slane %v1613_v50, %v427_v35 }
 0x2b7   :  { %827 = vmatpush1.bf16.msra.mxu1 %v1260_v41  ;;  %1160 = vmatpush3.bf16.msra.mxu0 %v1263_v42 }
 0x2b8   :  { %828 = vmatprep.subr.bf16.mxu1 %v1266_v43  ;;  %1161 = vmatprep.subr.bf16.mxu0 %v1282_v0  ;;  %v419_v0 = vsub.s32 3, %v1606_v47 }
 0x2ba   :  { %v420_v57 = vrot.slane %v1613_v50, %v419_v0 }
 0x2bb   :  { %829 = vmatpush1.bf16.msra.mxu1 %v1264_v44  ;;  %1162 = vmatpush3.bf16.msra.mxu0 %v1267_v45 }
 0x2be   :  { %847 = vmatmul.mubr.bf16.vlgmr.msra.gmra.mrb[8].mxu1 %v338_v24  ;;  %1164 = vmatmul.mubr.bf16.vlgmr.msra.gmra.mrb[12].mxu0 %v338_v24 }
 0x371   :  { %v762_v54 = vpop.f32.mrb[4].mxu1  ;;  %v805_v55 = vpop.f32.mrb[8].mxu0 }
 0x372   :  { %v764_v58 = vpop.f32.mrb[5].mxu1  ;;  %v807_v59 = vpop.f32.mrb[9].mxu0  ;;  %v763_v62 = vadd.f32 %v762_v54, %v408_v52  ;;  %v806_v63 = vadd.f32 %v805_v55, %v416_v53 }
 0x373   :  { %v766_v60 = vpop.f32.mrb[6].mxu1  ;;  %v809_v61 = vpop.f32.mrb[10].mxu0  ;;  %v765_v5 = vadd.f32 %v764_v58, %v412_v56  ;;  %v808_v6 = vadd.f32 %v807_v59, %v420_v57 }
 0x374   :  { %v767_v1 = vadd.f32 %v766_v60, %v408_v52  ;;  %v810_v2 = vadd.f32 %v809_v61, %v416_v53  ;;  %v768_v3 = vpop.f32.mrb[7].mxu1  ;;  %v811_v4 = vpop.f32.mrb[11].mxu0 }
 0x375   :  { %v769_v7 = vadd.f32 %v768_v3, %v412_v56  ;;  %v812_v8 = vadd.f32 %v811_v4, %v420_v57 }
 0x376   :  { %v898_v9 = vpack.c.bf16 %v767_v1, %v763_v62  ;;  %v900_v10 = vpack.c.bf16 %v810_v2, %v806_v63 }
 0x377   :  { %v899_v11 = vpack.c.bf16 %v769_v7, %v765_v5  ;;  %v901_v12 = vpack.c.bf16 %v812_v8, %v808_v6 }
 0x378   :  { %v905_v13 = vmul.bf16 1056980736, %v898_v9  ;;  %v907_v14 = vmul.bf16 1056980736, %v900_v10 }
 0x379   :  { %v906_v15 = vmul.bf16 1056980736, %v899_v11  ;;  %v908_v16 = vmul.bf16 1056980736, %v901_v12 }
 0x37a   :  { %1268 = vtanh.bf16 %v905_v13 }
 0x37b   :  { %1270 = vtanh.bf16 %v907_v14 }
 0x37c   :  { %1272 = vtanh.bf16 %v906_v15 }
 0x37d   :  { %1274 = vtanh.bf16 %v908_v16 }
 0x385   :  { %v1269_v17 = vpop.eup %1268 }
 0x386   :  { %v1271_v18 = vpop.eup %1270  ;;  %v919_v19 = vadd.bf16 1065369472, %v1269_v17 }
 0x387   :  { %v1273_v20 = vpop.eup %1272  ;;  %v921_v21 = vadd.bf16 1065369472, %v1271_v18 }
 0x388   :  { %v1275_v22 = vpop.eup %1274  ;;  %v926_v23 = vmul.bf16 1056980736, %v919_v19  ;;  %v920_v24 = vadd.bf16 1065369472, %v1273_v20 }
 0x389   :  { %v928_v25 = vmul.bf16 1056980736, %v921_v21  ;;  %v922_v26 = vadd.bf16 1065369472, %v1275_v22 }
 0x38a   :  { %v927_v27 = vmul.bf16 1056980736, %v920_v24 }
 0x38b   :  { %v929_v28 = vmul.bf16 1056980736, %v922_v26 }
 0x38c   :  { %v1061_v29 = vcombine.low %v926_v23, %v927_v27  ;;  %v1065_v30 = vcombine.high %v926_v23, %v927_v27 }
 0x38d   :  { %v1062_v33 = vcombine.low %v928_v25, %v929_v28  ;;  %v1066_v34 = vcombine.high %v928_v25, %v929_v28 }
 0x38e   :  { %970 = vst [vmem:[%s1660_s9] sm:$0xff] %v1061_v29  ;;  %975 = vst [vmem:[%s1660_s9 + $0x1c] sm:$0xff] %v1065_v30 }
 0x38f   :  { %971 = vst [vmem:[%s1660_s9 + $0x8] sm:$0xff] %v1062_v33  ;;  %976 = vst [vmem:[%s1660_s9 + $0x24] sm:$0xff] %v1066_v34 }
 0x391   :  { %v848_v38 = vpop.f32.mrb[8].mxu1  ;;  %v891_v39 = vpop.f32.mrb[12].mxu0 }
 0x392   :  { %v850_v41 = vpop.f32.mrb[9].mxu1  ;;  %v1165_v42 = vpop.f32.mrb[13].mxu0  ;;  %v849_v45 = vadd.f32 %v848_v38, %v424_v36  ;;  %v892_v46 = vadd.f32 %v891_v39, %v432_v37 }
 0x393   :  { %v852_v43 = vpop.f32.mrb[10].mxu1  ;;  %v894_v44 = vpop.f32.mrb[14].mxu0  ;;  %v851_v0 = vadd.f32 %v850_v41, %v428_v40 }
 0x394   :  { %v853_v47 = vadd.f32 %v852_v43, %v424_v36  ;;  %v895_v48 = vadd.f32 %v894_v44, %v432_v37  ;;  %v854_v49 = vpop.f32.mrb[11].mxu1  ;;  %v1166_v51 = vpop.f32.mrb[15].mxu0 }
 0x395   :  { %v855_v52 = vadd.f32 %v854_v49, %v428_v40 }
 0x396   :  { %v902_v53 = vpack.c.bf16 %v853_v47, %v849_v45  ;;  %v904_v54 = vpack.c.bf16 %v895_v48, %v892_v46 }
 0x397   :  { %v903_v55 = vpack.c.bf16 %v855_v52, %v851_v0 }
 0x398   :  { %v909_v56 = vmul.bf16 1056980736, %v902_v53  ;;  %v911_v57 = vmul.bf16 1056980736, %v904_v54 }
 0x399   :  { %v910_v58 = vmul.bf16 1056980736, %v903_v55 }
 0x39a   :  { %1276 = vtanh.bf16 %v909_v56 }
 0x39b   :  { %1278 = vtanh.bf16 %v911_v57 }
 0x39c   :  { %1280 = vtanh.bf16 %v910_v58 }
 0x3a5   :  { %v1277_v50 = vpop.eup %1276 }
 0x3a6   :  { %v1279_v59 = vpop.eup %1278  ;;  %v923_v60 = vadd.bf16 1065369472, %v1277_v50 }
 0x3a7   :  { %v1281_v61 = vpop.eup %1280  ;;  %v925_v62 = vadd.bf16 1065369472, %v1279_v59 }
 0x3a8   :  { %v930_v63 = vmul.bf16 1056980736, %v923_v60  ;;  %v924_v1 = vadd.bf16 1065369472, %v1281_v61 }
 0x3a9   :  { %v932_v2 = vmul.bf16 1056980736, %v925_v62 }
 0x3aa   :  { %v931_v3 = vmul.bf16 1056980736, %v924_v1 }
 0x3ab   :  { %v1064_v4 = vcombine.low %v932_v2, %v932_v2  ;;  %v1068_v5 = vcombine.high %v932_v2, %v932_v2 }
 0x3ac   :  { %v1063_v6 = vcombine.low %v930_v63, %v931_v3  ;;  %v1067_v7 = vcombine.high %v930_v63, %v931_v3 }
 0x3ad   :  { %974 = vst.msk [vmem:[%s1660_s9 + $0x18] sm:$0xf] %vm973_vm2, %v1064_v4  ;;  %978 = vst.msk [vmem:[%s1660_s9 + $0x34] sm:$0xf] %vm973_vm2, %v1068_v5 }
 0x3ae   :  { %972 = vst [vmem:[%s1660_s9 + $0x10] sm:$0xff] %v1063_v6  ;;  %977 = vst [vmem:[%s1660_s9 + $0x2c] sm:$0xff] %v1067_v7 }

</bundles_post_ra>
